<compile_context>
chip_gen: v5e
topology: v5e:2x2
jax: 0.10.0
libtpu: 0.0.40
codegen_flags: <defaults>
</compile_context>

<pallas_src>
import jax
import jax.numpy as jnp
from jax import lax
from jax.experimental import pallas as pl
from jax.experimental.pallas import tpu as pltpu

_LANE = 128          # lane width: class-tile width and the losses row
_NEG_INF = -1e30     # finite "-inf": padded classes drop out of logsumexp


def maba_head_kernel(vis_ref, cor_ref, txt_ref, pids_ref,
                     wg_ref, bg_ref, wc_ref, bc_ref, scale_ref,
                     final_vis_ref, final_txt_ref, logits_ref, losses_ref,
                     feat_scr, m_scr, s_scr, picked_scr, itc_scr):
    j = pl.program_id(0)
    n_ct = pl.num_programs(0)
    B = vis_ref.shape[0]
    TC = wc_ref.shape[1]

    # ---- step 0: fusion gate, final features, ITC loss, accumulator init ----
    @pl.when(j == 0)
    def _init():
        vis = vis_ref[...]                    # refined_vis[:, 0]        (B, D)
        cor = cor_ref[...]                    # dcc_outputs['corrected'] (B, D)
        txt = txt_ref[...]                    # refined_txt[:, -1]       (B, D)
        wg = wg_ref[...]                      # (2, D): row0 -> vis, row1 -> cor

        # fusion gate: sigmoid(W [vis; cor] + b), single fused reduction
        gate_pre = (jnp.sum(vis * wg[0:1, :] + cor * wg[1:2, :],
                            axis=-1, keepdims=True) + bg_ref[0])
        gamma = jax.nn.sigmoid(gate_pre)                       # (B, 1)
        final_vis = gamma * vis + (1.0 - gamma) * cor
        final_txt = txt
        final_vis_ref[...] = final_vis
        final_txt_ref[...] = final_txt

        # stacked bf16 features for the fused classifier matmul (one MXU pass)
        feat_scr[...] = jnp.concatenate([final_vis, final_txt],
                                        axis=0).astype(jnp.bfloat16)

        # online-logsumexp accumulators for the class-tiled ID loss
        m_scr[...] = jnp.full_like(m_scr, _NEG_INF)
        s_scr[...] = jnp.zeros_like(s_scr)
        picked_scr[...] = jnp.zeros_like(picked_scr)

        # ---- ITC loss: symmetric contrastive, no materialized log-softmax ----
        # TODO(synk): compute_itc is external to the given source; standard
        # symmetric CE over scaled similarities with diagonal targets assumed.
        scale = scale_ref[0]                  # logit_scale.exp(), precomputed
        sim = scale * lax.dot_general(
            final_vis, final_txt, (((1,), (1,)), ((), ())),
            preferred_element_type=jnp.float32)                # (B, B)
        rmax = jnp.max(sim, axis=1, keepdims=True)
        lse_r = rmax + jnp.log(jnp.sum(jnp.exp(sim - rmax), axis=1, keepdims=True))
        cmax = jnp.max(sim, axis=0, keepdims=True)
        lse_c = cmax + jnp.log(jnp.sum(jnp.exp(sim - cmax), axis=0, keepdims=True))
        r = lax.broadcasted_iota(jnp.int32, (B, B), 0)
        c = lax.broadcasted_iota(jnp.int32, (B, B), 1)
        diag_sum = jnp.sum(jnp.where(r == c, sim, 0.0), keepdims=True)   # (1,1)
        itc_scr[...] = -0.5 * (2.0 * diag_sum
                               - jnp.sum(lse_r, keepdims=True)
                               - jnp.sum(lse_c, keepdims=True)) / B

    # ---- every step: one class tile of the fused (img | txt) classifier ----
    logits = (jnp.dot(feat_scr[...], wc_ref[...],
                      preferred_element_type=jnp.float32)
              + bc_ref[...])                                    # (2B, TC) f32
    logits_ref[...] = logits

    # online logsumexp over class tiles
    tile_max = jnp.max(logits, axis=-1, keepdims=True)          # (2B, 1)
    m_new = jnp.maximum(m_scr[...], tile_max)
    alpha = jnp.exp(m_scr[...] - m_new)
    s_scr[...] = alpha * s_scr[...] + jnp.sum(jnp.exp(logits - m_new),
                                              axis=-1, keepdims=True)
    m_scr[...] = m_new

    # picked (target-class) logit accumulation within this tile
    pids = pids_ref[...]                                        # (B, 1) int32
    pids2 = jnp.concatenate([pids, pids], axis=0)               # (2B, 1)
    col = j * TC + lax.broadcasted_iota(jnp.int32, logits.shape, 1)
    picked_scr[...] += jnp.sum(jnp.where(col == pids2, logits, 0.0),
                               axis=-1, keepdims=True)

    # ---- last step: finalize ID loss, emit lane-dense losses row ----------
    @pl.when(j == n_ct - 1)
    def _finalize():
        # TODO(synk): compute_id is external; standard mean CE over the two
        # logit sets (0.5 * (CE_img + CE_txt)) assumed.
        lse = m_scr[...] + jnp.log(s_scr[...])                  # (2B, 1)
        id_loss = -jnp.sum(picked_scr[...] - lse, keepdims=True) / (2.0 * B)
        lane = lax.broadcasted_iota(jnp.int32, (1, losses_ref.shape[1]), 1)
        losses_ref[...] = jnp.where(lane == 0, itc_scr[...],
                                    jnp.where(lane == 1, id_loss, 0.0))


def maba_head(vis, cor, txt, pids, wg_flat, bg, wc, bc, scale, *,
              class_tile=_LANE):
    """vis/cor/txt: (B, D) f32; pids: (B, 1) int; wg_flat: (1, 2D);
    bg/scale: (1,) f32; wc: (D, C) f32; bc: (1, C) f32."""
    B, D = vis.shape
    C = wc.shape[1]
    C_pad = ((C + class_tile - 1) // class_tile) * class_tile
    n_ct = C_pad // class_tile

    # fusion-gate weight: (1, 2D) torch layout -> two lane-aligned rows (2, D)
    wg = wg_flat.reshape(2, D)
    # classifier weight in bf16 (MXU fast path, half the streamed bytes).
    # Padded classes: zero weight + -1e30 bias -> they vanish from both the
    # logsumexp and the one-hot pick.
    wc_p = jnp.zeros((D, C_pad), jnp.bfloat16).at[:, :C].set(wc.astype(jnp.bfloat16))
    bc_p = jnp.full((1, C_pad), _NEG_INF, jnp.float32).at[:, :C].set(
        bc.reshape(1, C).astype(jnp.float32))

    grid_spec = pltpu.PrefetchScalarGridSpec(
        num_scalar_prefetch=0,
        grid=(n_ct,),
        in_specs=[
            pl.BlockSpec((B, D), lambda j: (0, 0)),           # refined_vis[:, 0]
            pl.BlockSpec((B, D), lambda j: (0, 0)),           # dcc corrected
            pl.BlockSpec((B, D), lambda j: (0, 0)),           # refined_txt[:, -1]
            pl.BlockSpec((B, 1), lambda j: (0, 0)),           # pids
            pl.BlockSpec((2, D), lambda j: (0, 0)),           # fusion gate weight
            pl.BlockSpec(memory_space=pltpu.SMEM),            # fusion gate bias
            pl.BlockSpec((D, class_tile), lambda j: (0, j)),  # classifier W tile
            pl.BlockSpec((1, class_tile), lambda j: (0, j)),  # classifier b tile
            pl.BlockSpec(memory_space=pltpu.SMEM),            # exp(logit_scale)
        ],
        out_specs=(
            pl.BlockSpec((B, D), lambda j: (0, 0)),              # final img feats
            pl.BlockSpec((B, D), lambda j: (0, 0)),              # final txt feats
            pl.BlockSpec((2 * B, class_tile), lambda j: (0, j)), # stacked logits
            pl.BlockSpec((1, _LANE), lambda j: (0, 0)),          # [itc, id, 0...]
        ),
        scratch_shapes=[
            pltpu.VMEM((2 * B, D), jnp.bfloat16),   # stacked [vis; txt] features
            pltpu.VMEM((2 * B, 1), jnp.float32),    # running max
            pltpu.VMEM((2 * B, 1), jnp.float32),    # running sum(exp)
            pltpu.VMEM((2 * B, 1), jnp.float32),    # picked (target) logits
            pltpu.VMEM((1, 1), jnp.float32),        # itc loss
        ],
    )

    final_vis, final_txt, logits, losses = pl.pallas_call(
        maba_head_kernel,
        grid_spec=grid_spec,
        out_shape=(
            jax.ShapeDtypeStruct((B, D), jnp.float32),        # image features
            jax.ShapeDtypeStruct((B, D), jnp.float32),        # text features
            jax.ShapeDtypeStruct((2 * B, C_pad), jnp.float32),  # [img; txt] logits
            jax.ShapeDtypeStruct((1, _LANE), jnp.float32),    # losses row
        ),
        compiler_params=pltpu.CompilerParams(
            dimension_semantics=("arbitrary",),
            vmem_limit_bytes=32 * 1024 * 1024),
    )(vis, cor, txt, pids.astype(jnp.int32), wg, bg, wc_p, bc_p, scale)

    img_logits = logits[:B, :C]
    txt_logits = logits[B:, :C]
    itc_loss = losses[0, 0]
    id_loss = losses[0, 1]
    return final_vis, final_txt, img_logits, txt_logits, itc_loss, id_loss


if __name__ == "__main__":
    key = jax.random.PRNGKey(0)
    B, D, C = 8, 128, 200        # batch, embed_dim, num_identities (small)
    H = W = 16
    L, VOCAB = 8, 100            # caption length, stub vocab

    keys = jax.random.split(key, 10)

    # --- raw batch inputs (shapes the PyTorch module's forward consumes) ---
    images = jax.random.normal(keys[0], (B, 3, H, W), jnp.float32)   # NCHW
    caption_ids = jax.random.randint(keys[1], (B, L), 0, VOCAB)
    pids = jax.random.randint(keys[2], (B, 1), 0, C).astype(jnp.int32)

    # --- plain-JAX glue: deterministic stand-ins for the backbone stack ----
    # TODO(synk): CLIP visual/text encoders, IntraModalReasoning,
    # CrossModalRefinement and DiscriminativeClueCorrection are undefined in
    # the reference source; stubbed here as deterministic projections.
    w_vis = jax.random.normal(keys[3], (3 * H * W, D), jnp.float32) * 0.02
    w_cor = jax.random.normal(keys[4], (3 * H * W, D), jnp.float32) * 0.02
    emb = jax.random.normal(keys[5], (VOCAB, D), jnp.float32) * 0.02
    img_flat = images.reshape(B, -1)
    refined_vis0 = img_flat @ w_vis                        # ~ refined_vis[:, 0]
    dcc_corrected = jnp.tanh(img_flat @ w_cor)             # ~ dcc 'corrected'
    refined_txt_last = jnp.mean(emb[caption_ids], axis=1)  # ~ refined_txt[:, -1]

    # --- MaBa's own parameters (deterministic init per __init__) -----------
    bound = 1.0 / jnp.sqrt(2.0 * D)                        # nn.Linear default
    wg_flat = jax.random.uniform(keys[6], (1, 2 * D), jnp.float32, -bound, bound)
    bg = jax.random.uniform(keys[7], (1,), jnp.float32, -bound, bound)
    wc = (jax.random.normal(keys[8], (C, D), jnp.float32) * 0.01).T   # std=0.01
    bc = jnp.zeros((1, C), jnp.float32)                    # zeros_
    logit_scale = jnp.log(1.0 / 0.07)
    scale = jnp.exp(jnp.array([logit_scale], jnp.float32)) # logit_scale.exp()

    assert int(pids.max()) < C, "pids must be < num_classes"

    outs = maba_head(refined_vis0, dcc_corrected, refined_txt_last,
                     pids, wg_flat, bg, wc, bc, scale)
    final_vis, final_txt, img_logits, txt_logits, itc_loss, id_loss = \
        jax.block_until_ready(outs)

    # --- pure-JAX reference check -------------------------------------------
    gamma = jax.nn.sigmoid(jnp.concatenate([refined_vis0, dcc_corrected], axis=1)
                           @ wg_flat.T + bg)
    fv = gamma * refined_vis0 + (1.0 - gamma) * dcc_corrected
    ft = refined_txt_last
    ref_img_logits = fv @ wc + bc
    ref_txt_logits = ft @ wc + bc
    sim = scale[0] * fv @ ft.T
    eye = jnp.eye(B)
    ref_itc = -0.5 * (jnp.sum(eye * jax.nn.log_softmax(sim, axis=1))
                      + jnp.sum(eye * jax.nn.log_softmax(sim, axis=0))) / B
    onehot = jax.nn.one_hot(pids[:, 0], C)
    ref_id = -0.5 * (jnp.sum(onehot * jax.nn.log_softmax(ref_img_logits, axis=1))
                     + jnp.sum(onehot * jax.nn.log_softmax(ref_txt_logits, axis=1))) / B

    assert final_vis.shape == (B, D) and final_txt.shape == (B, D)
    assert img_logits.shape == (B, C) and txt_logits.shape == (B, C)
    assert bool(jnp.isfinite(itc_loss)) and bool(jnp.isfinite(id_loss))
    assert jnp.allclose(final_vis, fv, rtol=1e-5, atol=1e-5)
    assert jnp.allclose(final_txt, ft, rtol=1e-5, atol=1e-5)
    assert jnp.allclose(img_logits, ref_img_logits, rtol=2e-2, atol=2e-2)   # bf16 MXU
    assert jnp.allclose(txt_logits, ref_txt_logits, rtol=2e-2, atol=2e-2)   # bf16 MXU
    assert abs(float(itc_loss - ref_itc)) < 1e-3
    assert abs(float(id_loss - ref_id)) < 2e-2
    print("KERNEL_OK")
</pallas_src>

<mosaic_0001>
module attributes {stable_mosaic.version = 11 : i64} {
  func.func @maba_head_kernel(%arg0: i32, %arg1: memref<8x128xf32, #tpu.memory_space<vmem>>, %arg2: memref<8x128xf32, #tpu.memory_space<vmem>>, %arg3: memref<8x128xf32, #tpu.memory_space<vmem>>, %arg4: memref<8x1xi32, #tpu.memory_space<vmem>>, %arg5: memref<2x128xf32, #tpu.memory_space<vmem>>, %arg6: memref<1xf32, #tpu.memory_space<smem>>, %arg7: memref<128x128xbf16, #tpu.memory_space<vmem>>, %arg8: memref<1x128xf32, #tpu.memory_space<vmem>>, %arg9: memref<1xf32, #tpu.memory_space<smem>>, %arg10: memref<8x128xf32, #tpu.memory_space<vmem>>, %arg11: memref<8x128xf32, #tpu.memory_space<vmem>>, %arg12: memref<16x128xf32, #tpu.memory_space<vmem>>, %arg13: memref<1x128xf32, #tpu.memory_space<vmem>>, %arg14: memref<16x128xbf16, #tpu.memory_space<vmem>>, %arg15: memref<16x1xf32, #tpu.memory_space<vmem>>, %arg16: memref<16x1xf32, #tpu.memory_space<vmem>>, %arg17: memref<16x1xf32, #tpu.memory_space<vmem>>, %arg18: memref<1x1xf32, #tpu.memory_space<vmem>>) attributes {dimension_semantics = [#tpu.dimension_semantics<arbitrary>], iteration_bounds = array<i64: 2>, scalar_prefetch = 0 : i64, scratch_operands = 5 : i64, tpu.core_type = #tpu.core_type<tc>, window_params = [{pipeline_mode = #tpu.pipeline_mode<synchronous>, transform_indices = @transform_0, window_bounds = array<i64: 8, 128>}, {pipeline_mode = #tpu.pipeline_mode<synchronous>, transform_indices = @transform_1, window_bounds = array<i64: 8, 128>}, {pipeline_mode = #tpu.pipeline_mode<synchronous>, transform_indices = @transform_2, window_bounds = array<i64: 8, 128>}, {pipeline_mode = #tpu.pipeline_mode<synchronous>, transform_indices = @transform_3, window_bounds = array<i64: 8, 1>}, {pipeline_mode = #tpu.pipeline_mode<synchronous>, transform_indices = @transform_4, window_bounds = array<i64: 2, 128>}, {transform_indices = @transform_5, window_bounds = array<i64: 1>}, {transform_indices = @transform_6, window_bounds = array<i64: 128, 128>}, {transform_indices = @transform_7, window_bounds = array<i64: 1, 128>}, {transform_indices = @transform_8, window_bounds = array<i64: 1>}, {pipeline_mode = #tpu.pipeline_mode<synchronous>, transform_indices = @transform_9, window_bounds = array<i64: 8, 128>}, {pipeline_mode = #tpu.pipeline_mode<synchronous>, transform_indices = @transform_10, window_bounds = array<i64: 8, 128>}, {transform_indices = @transform_11, window_bounds = array<i64: 16, 128>}, {pipeline_mode = #tpu.pipeline_mode<synchronous>, transform_indices = @transform_12, window_bounds = array<i64: 1, 128>}]} {
    %c0_i32 = arith.constant 0 : i32
    %0 = arith.cmpi eq, %arg0, %c0_i32 : i32
    %1 = arith.extui %0 : i1 to i32
    %c0_i32_0 = arith.constant 0 : i32
    %2 = arith.cmpi ne, %1, %c0_i32_0 : i32
    scf.if %2 {
      %c0_29 = arith.constant 0 : index
      %c0_30 = arith.constant 0 : index
      %45 = vector.load %arg1[%c0_29, %c0_30] : memref<8x128xf32, #tpu.memory_space<vmem>>, vector<8x128xf32>
      %c0_31 = arith.constant 0 : index
      %c0_32 = arith.constant 0 : index
      %46 = vector.load %arg2[%c0_31, %c0_32] : memref<8x128xf32, #tpu.memory_space<vmem>>, vector<8x128xf32>
      %c0_33 = arith.constant 0 : index
      %c0_34 = arith.constant 0 : index
      %47 = vector.load %arg3[%c0_33, %c0_34] : memref<8x128xf32, #tpu.memory_space<vmem>>, vector<8x128xf32>
      %c0_35 = arith.constant 0 : index
      %c0_36 = arith.constant 0 : index
      %48 = vector.load %arg5[%c0_35, %c0_36] : memref<2x128xf32, #tpu.memory_space<vmem>>, vector<2x128xf32>
      %49 = vector.extract_strided_slice %48 {offsets = [0, 0], sizes = [1, 128], strides = [1, 1]} : vector<2x128xf32> to vector<1x128xf32>
      %50 = vector.broadcast %49 : vector<1x128xf32> to vector<8x128xf32>
      %51 = arith.mulf %45, %50 : vector<8x128xf32>
      %52 = vector.extract_strided_slice %48 {offsets = [1, 0], sizes = [1, 128], strides = [1, 1]} : vector<2x128xf32> to vector<1x128xf32>
      %53 = vector.broadcast %52 : vector<1x128xf32> to vector<8x128xf32>
      %54 = arith.mulf %46, %53 : vector<8x128xf32>
      %55 = arith.addf %51, %54 : vector<8x128xf32>
      %cst_37 = arith.constant dense<0.000000e+00> : vector<8xf32>
      %56 = vector.multi_reduction <add>, %55, %cst_37 [1] : vector<8x128xf32> to vector<8xf32>
      %57 = vector.shape_cast %56 : vector<8xf32> to vector<8x1xf32>
      %c0_38 = arith.constant 0 : index
      %58 = memref.load %arg6[%c0_38] : memref<1xf32, #tpu.memory_space<smem>>
      %59 = vector.broadcast %58 : f32 to vector<8x1xf32>
      %60 = arith.addf %57, %59 : vector<8x1xf32>
      %61 = arith.negf %60 : vector<8x1xf32>
      %62 = math.exp %61 : vector<8x1xf32>
      %cst_39 = arith.constant 1.000000e+00 : f32
      %63 = vector.broadcast %cst_39 : f32 to vector<8x1xf32>
      %64 = arith.addf %63, %62 : vector<8x1xf32>
      %65 = arith.divf %63, %64 : vector<8x1xf32>
      %66 = vector.broadcast %65 : vector<8x1xf32> to vector<8x128xf32>
      %67 = arith.mulf %66, %45 : vector<8x128xf32>
      %cst_40 = arith.constant 1.000000e+00 : f32
      %68 = vector.broadcast %cst_40 : f32 to vector<8x1xf32>
      %69 = arith.subf %68, %65 : vector<8x1xf32>
      %70 = vector.broadcast %69 : vector<8x1xf32> to vector<8x128xf32>
      %71 = arith.mulf %70, %46 : vector<8x128xf32>
      %72 = arith.addf %67, %71 : vector<8x128xf32>
      %c0_41 = arith.constant 0 : index
      %c0_42 = arith.constant 0 : index
      %73 = vector.load %arg10[%c0_41, %c0_42] : memref<8x128xf32, #tpu.memory_space<vmem>>, vector<8x128xf32>
      tpu.vector_store %arg10[%c0_41, %c0_42], %72 {strides = array<i32>} : memref<8x128xf32, #tpu.memory_space<vmem>>, vector<8x128xf32>,
      %c0_43 = arith.constant 0 : index
      %c0_44 = arith.constant 0 : index
      %74 = vector.load %arg11[%c0_43, %c0_44] : memref<8x128xf32, #tpu.memory_space<vmem>>, vector<8x128xf32>
      tpu.vector_store %arg11[%c0_43, %c0_44], %47 {strides = array<i32>} : memref<8x128xf32, #tpu.memory_space<vmem>>, vector<8x128xf32>,
      %75 = tpu.concatenate %72, %47 in 0 : vector<8x128xf32>, vector<8x128xf32> -> vector<16x128xf32>
      %76 = arith.truncf %75 : vector<16x128xf32> to vector<16x128xbf16>
      %c0_45 = arith.constant 0 : index
      %c0_46 = arith.constant 0 : index
      %77 = vector.load %arg14[%c0_45, %c0_46] : memref<16x128xbf16, #tpu.memory_space<vmem>>, vector<16x128xbf16>
      tpu.vector_store %arg14[%c0_45, %c0_46], %76 {strides = array<i32>} : memref<16x128xbf16, #tpu.memory_space<vmem>>, vector<16x128xbf16>,
      %cst_47 = arith.constant -1.000000e+30 : f32
      %78 = vector.broadcast %cst_47 : f32 to vector<16x1xf32>
      %c0_48 = arith.constant 0 : index
      %c0_49 = arith.constant 0 : index
      %79 = vector.load %arg15[%c0_48, %c0_49] : memref<16x1xf32, #tpu.memory_space<vmem>>, vector<16x1xf32>
      tpu.vector_store %arg15[%c0_48, %c0_49], %78 {strides = array<i32>} : memref<16x1xf32, #tpu.memory_space<vmem>>, vector<16x1xf32>,
      %cst_50 = arith.constant 0.000000e+00 : f32
      %80 = vector.broadcast %cst_50 : f32 to vector<16x1xf32>
      %c0_51 = arith.constant 0 : index
      %c0_52 = arith.constant 0 : index
      %81 = vector.load %arg16[%c0_51, %c0_52] : memref<16x1xf32, #tpu.memory_space<vmem>>, vector<16x1xf32>
      tpu.vector_store %arg16[%c0_51, %c0_52], %80 {strides = array<i32>} : memref<16x1xf32, #tpu.memory_space<vmem>>, vector<16x1xf32>,
      %cst_53 = arith.constant 0.000000e+00 : f32
      %82 = vector.broadcast %cst_53 : f32 to vector<16x1xf32>
      %c0_54 = arith.constant 0 : index
      %c0_55 = arith.constant 0 : index
      %83 = vector.load %arg17[%c0_54, %c0_55] : memref<16x1xf32, #tpu.memory_space<vmem>>, vector<16x1xf32>
      tpu.vector_store %arg17[%c0_54, %c0_55], %82 {strides = array<i32>} : memref<16x1xf32, #tpu.memory_space<vmem>>, vector<16x1xf32>,
      %c0_56 = arith.constant 0 : index
      %84 = memref.load %arg9[%c0_56] : memref<1xf32, #tpu.memory_space<smem>>
      %cst_57 = arith.constant dense<0.000000e+00> : vector<8x8xf32>
      %85 = tpu.matmul %72, %47, %cst_57 {dimension_numbers = #tpu.dot_dimension_numbers<[1], [1], [0], [0], [0, 0, 1, 0], [], []>} : vector<8x128xf32>, vector<8x128xf32>, vector<8x8xf32> -> vector<8x8xf32>
      %86 = vector.broadcast %84 : f32 to vector<8x8xf32>
      %87 = arith.mulf %86, %85 : vector<8x8xf32>
      %cst_58 = arith.constant dense<0xFF800000> : vector<8xf32>
      %88 = vector.multi_reduction <maximumf>, %87, %cst_58 [1] : vector<8x8xf32> to vector<8xf32>
      %89 = vector.shape_cast %88 : vector<8xf32> to vector<8x1xf32>
      %90 = vector.broadcast %89 : vector<8x1xf32> to vector<8x8xf32>
      %91 = arith.subf %87, %90 : vector<8x8xf32>
      %92 = math.exp %91 : vector<8x8xf32>
      %cst_59 = arith.constant dense<0.000000e+00> : vector<8xf32>
      %93 = vector.multi_reduction <add>, %92, %cst_59 [1] : vector<8x8xf32> to vector<8xf32>
      %94 = vector.shape_cast %93 : vector<8xf32> to vector<8x1xf32>
      %95 = math.log %94 : vector<8x1xf32>
      %96 = arith.addf %89, %95 : vector<8x1xf32>
      %cst_60 = arith.constant dense<0xFF800000> : vector<8xf32>
      %97 = vector.multi_reduction <maximumf>, %87, %cst_60 [0] : vector<8x8xf32> to vector<8xf32>
      %98 = vector.shape_cast %97 : vector<8xf32> to vector<1x8xf32>
      %99 = vector.broadcast %98 : vector<1x8xf32> to vector<8x8xf32>
      %100 = arith.subf %87, %99 : vector<8x8xf32>
      %101 = math.exp %100 : vector<8x8xf32>
      %cst_61 = arith.constant dense<0.000000e+00> : vector<8xf32>
      %102 = vector.multi_reduction <add>, %101, %cst_61 [0] : vector<8x8xf32> to vector<8xf32>
      %103 = vector.shape_cast %102 : vector<8xf32> to vector<1x8xf32>
      %104 = math.log %103 : vector<1x8xf32>
      %105 = arith.addf %98, %104 : vector<1x8xf32>
      %106 = tpu.iota {dimensions = array<i32: 0>} : vector<8x8xi32>
      %107 = tpu.iota {dimensions = array<i32: 1>} : vector<8x8xi32>
      %108 = arith.cmpi eq, %106, %107 : vector<8x8xi32>
      %cst_62 = arith.constant 0.000000e+00 : f32
      %109 = vector.broadcast %cst_62 : f32 to vector<8x8xf32>
      %110 = arith.select %108, %87, %109 : vector<8x8xi1>, vector<8x8xf32>
      %111 = vector.shape_cast %110 : vector<8x8xf32> to vector<1x8x8xf32>
      %cst_63 = arith.constant dense<0.000000e+00> : vector<1xf32>
      %112 = vector.multi_reduction <add>, %111, %cst_63 [1, 2] : vector<1x8x8xf32> to vector<1xf32>
      %113 = vector.shape_cast %112 : vector<1xf32> to vector<1x1x1xf32>
      %114 = vector.extract %113[0, 0, 0] : f32 from vector<1x1x1xf32>
      %115 = vector.broadcast %114 : f32 to vector<1x1xf32>
      %cst_64 = arith.constant 2.000000e+00 : f32
      %116 = vector.broadcast %cst_64 : f32 to vector<1x1xf32>
      %117 = arith.mulf %116, %115 : vector<1x1xf32>
      %118 = vector.shape_cast %96 : vector<8x1xf32> to vector<1x8x1xf32>
      %cst_65 = arith.constant dense<0.000000e+00> : vector<1xf32>
      %119 = vector.multi_reduction <add>, %118, %cst_65 [1, 2] : vector<1x8x1xf32> to vector<1xf32>
      %120 = vector.shape_cast %119 : vector<1xf32> to vector<1x1x1xf32>
      %121 = vector.extract %120[0, 0, 0] : f32 from vector<1x1x1xf32>
      %122 = vector.broadcast %121 : f32 to vector<1x1xf32>
      %123 = arith.subf %117, %122 : vector<1x1xf32>
      %124 = vector.shape_cast %105 : vector<1x8xf32> to vector<1x1x8xf32>
      %cst_66 = arith.constant dense<0.000000e+00> : vector<1xf32>
      %125 = vector.multi_reduction <add>, %124, %cst_66 [1, 2] : vector<1x1x8xf32> to vector<1xf32>
      %126 = vector.shape_cast %125 : vector<1xf32> to vector<1x1x1xf32>
      %127 = vector.extract %126[0, 0, 0] : f32 from vector<1x1x1xf32>
      %128 = vector.broadcast %127 : f32 to vector<1x1xf32>
      %129 = arith.subf %123, %128 : vector<1x1xf32>
      %cst_67 = arith.constant -5.000000e-01 : f32
      %130 = vector.broadcast %cst_67 : f32 to vector<1x1xf32>
      %131 = arith.mulf %130, %129 : vector<1x1xf32>
      %cst_68 = arith.constant 8.000000e+00 : f32
      %132 = vector.broadcast %cst_68 : f32 to vector<1x1xf32>
      %133 = arith.divf %131, %132 : vector<1x1xf32>
      %c0_69 = arith.constant 0 : index
      %c0_70 = arith.constant 0 : index
      %134 = vector.load %arg18[%c0_69, %c0_70] : memref<1x1xf32, #tpu.memory_space<vmem>>, vector<1x1xf32>
      tpu.vector_store %arg18[%c0_69, %c0_70], %133 {strides = array<i32>} : memref<1x1xf32, #tpu.memory_space<vmem>>, vector<1x1xf32>,
    } else {
    }
    %c0 = arith.constant 0 : index
    %c0_1 = arith.constant 0 : index
    %3 = vector.load %arg14[%c0, %c0_1] : memref<16x128xbf16, #tpu.memory_space<vmem>>, vector<16x128xbf16>
    %c0_2 = arith.constant 0 : index
    %c0_3 = arith.constant 0 : index
    %4 = vector.load %arg7[%c0_2, %c0_3] : memref<128x128xbf16, #tpu.memory_space<vmem>>, vector<128x128xbf16>
    %cst = arith.constant dense<0.000000e+00> : vector<16x128xf32>
    %5 = tpu.matmul %3, %4, %cst {dimension_numbers = #tpu.dot_dimension_numbers<[1], [0], [0], [1], [0, 0, 1, 1], [], []>} : vector<16x128xbf16>, vector<128x128xbf16>, vector<16x128xf32> -> vector<16x128xf32>
    %c0_4 = arith.constant 0 : index
    %c0_5 = arith.constant 0 : index
    %6 = vector.load %arg8[%c0_4, %c0_5] : memref<1x128xf32, #tpu.memory_space<vmem>>, vector<1x128xf32>
    %7 = vector.broadcast %6 : vector<1x128xf32> to vector<16x128xf32>
    %8 = arith.addf %5, %7 : vector<16x128xf32>
    %c0_6 = arith.constant 0 : index
    %c0_7 = arith.constant 0 : index
    %9 = vector.load %arg12[%c0_6, %c0_7] : memref<16x128xf32, #tpu.memory_space<vmem>>, vector<16x128xf32>
    tpu.vector_store %arg12[%c0_6, %c0_7], %8 {strides = array<i32>} : memref<16x128xf32, #tpu.memory_space<vmem>>, vector<16x128xf32>,
    %cst_8 = arith.constant dense<0xFF800000> : vector<16xf32>
    %10 = vector.multi_reduction <maximumf>, %8, %cst_8 [1] : vector<16x128xf32> to vector<16xf32>
    %11 = vector.shape_cast %10 : vector<16xf32> to vector<16x1xf32>
    %c0_9 = arith.constant 0 : index
    %c0_10 = arith.constant 0 : index
    %12 = vector.load %arg15[%c0_9, %c0_10] : memref<16x1xf32, #tpu.memory_space<vmem>>, vector<16x1xf32>
    %13 = arith.maximumf %12, %11 : vector<16x1xf32>
    %c0_11 = arith.constant 0 : index
    %c0_12 = arith.constant 0 : index
    %14 = vector.load %arg15[%c0_11, %c0_12] : memref<16x1xf32, #tpu.memory_space<vmem>>, vector<16x1xf32>
    %15 = arith.subf %14, %13 : vector<16x1xf32>
    %16 = math.exp %15 : vector<16x1xf32>
    %c0_13 = arith.constant 0 : index
    %c0_14 = arith.constant 0 : index
    %17 = vector.load %arg16[%c0_13, %c0_14] : memref<16x1xf32, #tpu.memory_space<vmem>>, vector<16x1xf32>
    %18 = arith.mulf %16, %17 : vector<16x1xf32>
    %19 = vector.broadcast %13 : vector<16x1xf32> to vector<16x128xf32>
    %20 = arith.subf %8, %19 : vector<16x128xf32>
    %21 = math.exp %20 : vector<16x128xf32>
    %cst_15 = arith.constant dense<0.000000e+00> : vector<16xf32>
    %22 = vector.multi_reduction <add>, %21, %cst_15 [1] : vector<16x128xf32> to vector<16xf32>
    %23 = vector.shape_cast %22 : vector<16xf32> to vector<16x1xf32>
    %24 = arith.addf %18, %23 : vector<16x1xf32>
    %c0_16 = arith.constant 0 : index
    %c0_17 = arith.constant 0 : index
    %25 = vector.load %arg16[%c0_16, %c0_17] : memref<16x1xf32, #tpu.memory_space<vmem>>, vector<16x1xf32>
    tpu.vector_store %arg16[%c0_16, %c0_17], %24 {strides = array<i32>} : memref<16x1xf32, #tpu.memory_space<vmem>>, vector<16x1xf32>,
    %c0_18 = arith.constant 0 : index
    %c0_19 = arith.constant 0 : index
    %26 = vector.load %arg15[%c0_18, %c0_19] : memref<16x1xf32, #tpu.memory_space<vmem>>, vector<16x1xf32>
    tpu.vector_store %arg15[%c0_18, %c0_19], %13 {strides = array<i32>} : memref<16x1xf32, #tpu.memory_space<vmem>>, vector<16x1xf32>,
    %c0_20 = arith.constant 0 : index
    %c0_21 = arith.constant 0 : index
    %27 = vector.load %arg4[%c0_20, %c0_21] : memref<8x1xi32, #tpu.memory_space<vmem>>, vector<8x1xi32>
    %28 = tpu.concatenate %27, %27 in 0 : vector<8x1xi32>, vector<8x1xi32> -> vector<16x1xi32>
    %c128_i32 = arith.constant 128 : i32
    %29 = arith.muli %arg0, %c128_i32 : i32
    %30 = tpu.iota {dimensions = array<i32: 1>} : vector<16x128xi32>
    %31 = vector.broadcast %29 : i32 to vector<16x128xi32>
    %32 = arith.addi %31, %30 : vector<16x128xi32>
    %c0_22 = arith.constant 0 : index
    %c0_23 = arith.constant 0 : index
    %33 = vector.load %arg17[%c0_22, %c0_23] : memref<16x1xf32, #tpu.memory_space<vmem>>, vector<16x1xf32>
    %34 = vector.broadcast %28 : vector<16x1xi32> to vector<16x128xi32>
    %35 = arith.cmpi eq, %32, %34 : vector<16x128xi32>
    %cst_24 = arith.constant 0.000000e+00 : f32
    %36 = vector.broadcast %cst_24 : f32 to vector<16x128xf32>
    %37 = arith.select %35, %8, %36 : vector<16x128xi1>, vector<16x128xf32>
    %cst_25 = arith.constant dense<0.000000e+00> : vector<16xf32>
    %38 = vector.multi_reduction <add>, %37, %cst_25 [1] : vector<16x128xf32> to vector<16xf32>
    %39 = vector.shape_cast %38 : vector<16xf32> to vector<16x1xf32>
    %40 = arith.addf %33, %39 : vector<16x1xf32>
    %c0_26 = arith.constant 0 : index
    %c0_27 = arith.constant 0 : index
    %41 = vector.load %arg17[%c0_26, %c0_27] : memref<16x1xf32, #tpu.memory_space<vmem>>, vector<16x1xf32>
    tpu.vector_store %arg17[%c0_26, %c0_27], %40 {strides = array<i32>} : memref<16x1xf32, #tpu.memory_space<vmem>>, vector<16x1xf32>,
    %c1_i32 = arith.constant 1 : i32
    %42 = arith.cmpi eq, %arg0, %c1_i32 : i32
    %43 = arith.extui %42 : i1 to i32
    %c0_i32_28 = arith.constant 0 : i32
    %44 = arith.cmpi ne, %43, %c0_i32_28 : i32
    scf.if %44 {
      %c0_29 = arith.constant 0 : index
      %c0_30 = arith.constant 0 : index
      %45 = vector.load %arg15[%c0_29, %c0_30] : memref<16x1xf32, #tpu.memory_space<vmem>>, vector<16x1xf32>
      %c0_31 = arith.constant 0 : index
      %c0_32 = arith.constant 0 : index
      %46 = vector.load %arg16[%c0_31, %c0_32] : memref<16x1xf32, #tpu.memory_space<vmem>>, vector<16x1xf32>
      %47 = math.log %46 : vector<16x1xf32>
      %48 = arith.addf %45, %47 : vector<16x1xf32>
      %c0_33 = arith.constant 0 : index
      %c0_34 = arith.constant 0 : index
      %49 = vector.load %arg17[%c0_33, %c0_34] : memref<16x1xf32, #tpu.memory_space<vmem>>, vector<16x1xf32>
      %50 = arith.subf %49, %48 : vector<16x1xf32>
      %51 = vector.shape_cast %50 : vector<16x1xf32> to vector<1x16x1xf32>
      %cst_35 = arith.constant dense<0.000000e+00> : vector<1xf32>
      %52 = vector.multi_reduction <add>, %51, %cst_35 [1, 2] : vector<1x16x1xf32> to vector<1xf32>
      %53 = vector.shape_cast %52 : vector<1xf32> to vector<1x1x1xf32>
      %54 = vector.extract %53[0, 0, 0] : f32 from vector<1x1x1xf32>
      %55 = vector.broadcast %54 : f32 to vector<1x1xf32>
      %cst_36 = arith.constant 0.000000e+00 : f32
      %56 = vector.broadcast %cst_36 : f32 to vector<1x1xf32>
      %57 = arith.subf %56, %55 : vector<1x1xf32>
      %cst_37 = arith.constant 1.600000e+01 : f32
      %58 = vector.broadcast %cst_37 : f32 to vector<1x1xf32>
      %59 = arith.divf %57, %58 : vector<1x1xf32>
      %60 = tpu.iota {dimensions = array<i32: 1>} : vector<1x128xi32>
      %c0_i32_38 = arith.constant 0 : i32
      %61 = vector.broadcast %c0_i32_38 : i32 to vector<1x128xi32>
      %62 = arith.cmpi eq, %60, %61 : vector<1x128xi32>
      %c0_39 = arith.constant 0 : index
      %c0_40 = arith.constant 0 : index
      %63 = vector.load %arg18[%c0_39, %c0_40] : memref<1x1xf32, #tpu.memory_space<vmem>>, vector<1x1xf32>
      %c1_i32_41 = arith.constant 1 : i32
      %64 = vector.broadcast %c1_i32_41 : i32 to vector<1x128xi32>
      %65 = arith.cmpi eq, %60, %64 : vector<1x128xi32>
      %cst_42 = arith.constant 0.000000e+00 : f32
      %66 = vector.shape_cast %59 : vector<1x1xf32> to vector<1x1xf32>
      %67 = vector.broadcast %66 : vector<1x1xf32> to vector<1x128xf32>
      %68 = vector.broadcast %cst_42 : f32 to vector<1x128xf32>
      %69 = arith.select %65, %67, %68 : vector<1x128xi1>, vector<1x128xf32>
      %70 = vector.shape_cast %63 : vector<1x1xf32> to vector<1x1xf32>
      %71 = vector.broadcast %70 : vector<1x1xf32> to vector<1x128xf32>
      %72 = arith.select %62, %71, %69 : vector<1x128xi1>, vector<1x128xf32>
      %c0_43 = arith.constant 0 : index
      %c0_44 = arith.constant 0 : index
      %73 = vector.load %arg13[%c0_43, %c0_44] : memref<1x128xf32, #tpu.memory_space<vmem>>, vector<1x128xf32>
      tpu.vector_store %arg13[%c0_43, %c0_44], %72 {strides = array<i32>} : memref<1x128xf32, #tpu.memory_space<vmem>>, vector<1x128xf32>,
    } else {
    }
    return
  }
  func.func @transform_0(%arg0: i32) -> (i32, i32) {
    %c0_i32 = arith.constant 0 : i32
    %c0_i32_0 = arith.constant 0 : i32
    %c0_i32_1 = arith.constant 0 : i32
    return %c0_i32, %c0_i32_0 : i32, i32
  }
  func.func @transform_1(%arg0: i32) -> (i32, i32) {
    %c0_i32 = arith.constant 0 : i32
    %c0_i32_0 = arith.constant 0 : i32
    %c0_i32_1 = arith.constant 0 : i32
    return %c0_i32, %c0_i32_0 : i32, i32
  }
  func.func @transform_2(%arg0: i32) -> (i32, i32) {
    %c0_i32 = arith.constant 0 : i32
    %c0_i32_0 = arith.constant 0 : i32
    %c0_i32_1 = arith.constant 0 : i32
    return %c0_i32, %c0_i32_0 : i32, i32
  }
  func.func @transform_3(%arg0: i32) -> (i32, i32) {
    %c0_i32 = arith.constant 0 : i32
    %c0_i32_0 = arith.constant 0 : i32
    %c0_i32_1 = arith.constant 0 : i32
    return %c0_i32, %c0_i32_0 : i32, i32
  }
  func.func @transform_4(%arg0: i32) -> (i32, i32) {
    %c0_i32 = arith.constant 0 : i32
    %c0_i32_0 = arith.constant 0 : i32
    %c0_i32_1 = arith.constant 0 : i32
    return %c0_i32, %c0_i32_0 : i32, i32
  }
  func.func @transform_5(%arg0: i32) -> i32 {
    %c0_i32 = arith.constant 0 : i32
    %c0_i32_0 = arith.constant 0 : i32
    return %c0_i32 : i32
  }
  func.func @transform_6(%arg0: i32) -> (i32, i32) {
    %c0_i32 = arith.constant 0 : i32
    %c0_i32_0 = arith.constant 0 : i32
    return %c0_i32, %arg0 : i32, i32
  }
  func.func @transform_7(%arg0: i32) -> (i32, i32) {
    %c0_i32 = arith.constant 0 : i32
    %c0_i32_0 = arith.constant 0 : i32
    return %c0_i32, %arg0 : i32, i32
  }
  func.func @transform_8(%arg0: i32) -> i32 {
    %c0_i32 = arith.constant 0 : i32
    %c0_i32_0 = arith.constant 0 : i32
    return %c0_i32 : i32
  }
  func.func @transform_9(%arg0: i32) -> (i32, i32) {
    %c0_i32 = arith.constant 0 : i32
    %c0_i32_0 = arith.constant 0 : i32
    %c0_i32_1 = arith.constant 0 : i32
    return %c0_i32, %c0_i32_0 : i32, i32
  }
  func.func @transform_10(%arg0: i32) -> (i32, i32) {
    %c0_i32 = arith.constant 0 : i32
    %c0_i32_0 = arith.constant 0 : i32
    %c0_i32_1 = arith.constant 0 : i32
    return %c0_i32, %c0_i32_0 : i32, i32
  }
  func.func @transform_11(%arg0: i32) -> (i32, i32) {
    %c0_i32 = arith.constant 0 : i32
    %c0_i32_0 = arith.constant 0 : i32
    return %c0_i32, %arg0 : i32, i32
  }
  func.func @transform_12(%arg0: i32) -> (i32, i32) {
    %c0_i32 = arith.constant 0 : i32
    %c0_i32_0 = arith.constant 0 : i32
    %c0_i32_1 = arith.constant 0 : i32
    return %c0_i32, %c0_i32_0 : i32, i32
  }
}

</mosaic_0001>

<bundles_post_ra>
// kernel: tpu_custom_call.1
= control target key start
LH: loop header
LB: loop body
LE: loop exit
PB: predicated region body
PF: predicated region fallthrough
CT: control target
= control target key end

     0   :  { %s1831_s0 = inlined_call_operand.vmem [shape: f32[8,128], index: 0, kind: input, shape index: {}]   ;;  %s1832_s1 = inlined_call_operand.hbm [shape: f32[8,128], index: 1, kind: input, shape index: {}]   ;;  %s1833_s2 = inlined_call_operand.hbm [shape: f32[8,128], index: 2, kind: input, shape index: {}]   ;;  %s1834_s3 = inlined_call_operand.vmem [shape: s32[8,1], index: 3, kind: input, shape index: {}]   ;;  %s1835_s4 = inlined_call_operand.vmem [shape: f32[2,128], index: 4, kind: input, shape index: {}]   ;;  %s1836_s5 = inlined_call_operand.<no memory space> [shape: f32[1], index: 5, kind: input, shape index: {}]   ;;  %s1837_s6 = inlined_call_operand.hbm [shape: bf16[128,256], index: 6, kind: input, shape index: {}]   ;;  %s1838_s7 = inlined_call_operand.vmem [shape: f32[1,256], index: 7, kind: input, shape index: {}]   ;;  %s1839_s8 = inlined_call_operand.<no memory space> [shape: f32[1], index: 8, kind: input, shape index: {}]   ;;  %s1840_s9 = inlined_call_operand.hbm [shape: f32[8,128], index: 9, kind: output, shape index: {0}]   ;;  %s1841_s10 = inlined_call_operand.hbm [shape: f32[8,128], index: 10, kind: output, shape index: {1}]   ;;  %s1842_s11 = inlined_call_operand.hbm [shape: f32[16,256], index: 11, kind: output, shape index: {2}]   ;;  %s1843_s12 = inlined_call_operand.hbm [shape: f32[1,128], index: 12, kind: output, shape index: {3}]  }
   0x1   :  { %1849 = sst [smem:[#allocation29_spill]] %s1832_s1 }
   0x2   :  { %1850 = sst [smem:[#allocation30_spill]] %s1833_s2 }
   0x3   :  { %1851 = sst [smem:[#allocation31_spill]] %s1843_s12 }
   0x4   :  { %18 = sst [smem:[#allocation7]] %s1836_s5 }
   0x5   :  { %19 = sst [smem:[#allocation8]] %s1839_s8 }
   0x6   :  { %20 = vsyncpa [#allocation10], 0 }
   0x7   :  { %21 = vsyncpa [#allocation13], 0 }
   0x8   :  { %22 = vsyncpa [#allocation11], 0 }
   0x9   :  { %23 = vsyncpa [#allocation17], 0  ;;  %s1590_s25 = smov 0   ;;  %s1592_s26 = smov 0  }
   0xa   :  { %s1594_s27 = smov 0   ;;  %s1596_s28 = smov 0  }
   0xb LB: > { %s1609_s5 = sadd.s32 4294967295, %s1500_s28   ;;  %s1844_s8 = sadd.s32 4294967294, %s1500_s28   ;;  %s1500_s28 = sphi %s1596_s28, %s1875_s28   ;;  %s1496_s27 = sphi %s1594_s27, %s1879_s27   ;;  %s1492_s26 = sphi %s1592_s26, %s1878_s26   ;;  %s1488_s25 = sphi %s1590_s25, %s1877_s25  }
   0xc   : > { %s1613_s29 = sadd.s32 1, %s1500_s28   ;;  %s162_s30 = sadd.s32 1, %s1496_s27 }
   0xd   : > { %1852 = sst [smem:[#allocation26_spill]] %s1613_s29  ;;  %s159_s13 = ssub.s32 %s1500_s28, %s1613_s29 }
   0xe   : > { %p169_p0 = scmp.ne.s32.totalorder %s1496_s27, %s1492_s26  ;;  %p160_p1 = scmp.eq.s32.totalorder %s159_s13, 0 }
   0xf   : > { %p170_p2 = scmp.eq.s32.totalorder %s1500_s28, 0  ;;  %p175_p3 = scmp.ne.s32.totalorder %s1492_s26, %s1488_s25 }
  0x10   : > { %p176_p4 = scmp.eq.s32.totalorder %s1609_s5, 0  ;;  %p1848_p7 = scmp.eq.s32.totalorder %s1609_s5, 1 }
  0x11   : > { %s1624_s14 = scalar_select %p160_p1, %s1496_s27, %s162_s30  }
  0x12   : > { %p1626_p5 = por %p170_p2, %p169_p0  ;;  %p1632_p6 = por %p176_p4, %p175_p3 }
  0x13   : > { %1853 = sst [smem:[#allocation27_spill]] %s1624_s14  ;;  %p294_p8 = scmp.eq.s32.totalorder %s1844_s8, 1 }
  0x14   : > { %p1028_p9 = scmp.ge.s32.totalorder %s1500_s28, 1  ;;  %p322_p10 = scmp.lt.s32.totalorder %s1500_s28, 3 }
  0x15   : > { %p1643_p11 = por %p1848_p7, %p169_p0  ;;  %p1647_p12 = por %p294_p8, %p175_p3 }
  0x16   : > { %p1651_p13 = pnand %p1028_p9, %p322_p10  ;;  %s1860_s1 = sld [smem:[#allocation29_spill]] }
  0x17   : > { %s1857_s18 = scalar_select %p1647_p12, 1, 0 }
  0x18   : > { %p1135_p0 = pneg %p1651_p13  ;;  %s1502_s23 = smov [#allocation9]  }
  0x19   : > { %1858 = sst [smem:[#allocation28_spill]] %s1857_s18  ;;  %s339_s24 = sshll.u32 %s1502_s23, 4  ;;  %s340_s24 = int_to_ptr.vmem [resolvable:$true] %s339_s24 }
  0x1a   : > { %p1136_p3 = pnand %p1135_p0, %p176_p4  ;;  %p1152_p8 = scmp.lt.s32.totalorder %s1500_s28, 2 }
  0x1b   : > { %s1861_s2 = sld [smem:[#allocation30_spill]]  ;;  %s1503_s21 = smov [#allocation12]  }
  0x1c   : > { %s337_s22 = sshll.u32 %s1860_s1, 4  ;;  %p1670_p9 = pnand %p1152_p8, %p1626_p5  ;;  %s338_s22 = int_to_ptr.hbm [resolvable:$true] %s337_s22 }
  0x1d   : > { %1138 = dma.hbm_to_vmem [thread:$0]  (!%p1136_p3), %s338_s22, 128, %s340_s24, [#allocation10]  }
  0x1e   : > { %s351_s8 = sshll.u32 %s1503_s21, 4  ;;  %s374_s23 = sand.u32 1, %s1500_s28   ;;  %s352_s8 = int_to_ptr.vmem [resolvable:$true] %s351_s8 }
  0x1f   : > { %s376_s1 = sand.u32 1, %s1496_s27   ;;  %s1033_s29 = sshll.u32 %s1500_s28, 2 }
  0x20   : > { %s1032_s14 = sshll.u32 %s376_s1, 6  ;;  %s382_s25 = scalar_lea.hbm %s1837_s6, %s1033_s29 }
  0x21   : > { %s349_s13 = sshll.u32 %s1861_s2, 4  ;;  %s383_s30 = sshll.u32 %s382_s25, 4  ;;  %s350_s13 = int_to_ptr.hbm [resolvable:$true] %s349_s13  ;;  %s384_s30 = int_to_ptr.hbm [resolvable:$true] %s383_s30 }
  0x22   : > { %1141 = dma.hbm_to_vmem [thread:$0]  (!%p1136_p3), %s350_s13, 128, %s352_s8, [#allocation13]  }
  0x23   : > { %s378_s22 = scalar_lea.vmem [#allocation14], %s1032_s14  ;;  %s375_s24 = scalar_lea.sflag [#allocation10], %s374_s23 }
  0x24   : > { %s385_s15 = sshll.u32 %s378_s22, 4  ;;  %s1304_s2 = sshra.s32 %s384_s30, 4  ;;  %s386_s15 = int_to_ptr.vmem [resolvable:$true] %s385_s15  ;;  %s1305_s2 = int_to_ptr.hbm [resolvable:$true] %s1304_s2 }
  0x25   : > { %s1306_s21 = scalar_lea.hbm %s1305_s2, 64  ;;  %p1308_p10 = pneg %p1670_p9 }
  0x26   : > { %p1307_p5 = scmp.ne.s32.totalorder %s1305_s2, %s1306_s21  ;;  %s1311_s13 = scalar_lea.hbm %s1837_s6, 128 }
  0x27   : > { %p1312_p8 = scmp.lt.s32.totalorder %s1305_s2, %s1837_s6  ;;  %p1313_p2 = scmp.lt.s32.totalorder %s1311_s13, %s1306_s21 }
  0x28   : > { %p1309_p0 = pnand %p1308_p10, %p1307_p5 }
  0x29   : > { %p1314_p7 = por %p1313_p2, %p1312_p8 }
  0x2a   : > { %p1310_p3 = pneg %p1309_p0 }
  0x2c   : > { %p1315_p1 = pnand %p1314_p7, %p1310_p3 }
  0x2e   : > { %1318 = shalt.err (!%p1315_p1)
}
  0x2f   : > { %s1504_s14 = smov 128   ;;  %s1505_s18 = smov 64  }
  0x30   : > { %s1506_s23 = smov 4   ;;  %403 = sbr.rel (%p1651_p13) target bundleno = 1586 (0x632), region = 56 }
  0x31   : > { %1145 = dma.hbm_to_vmem [thread:$0]  (!%p1670_p9), %s384_s30, 1024, %s386_s15, %s375_s24, %s1504_s14, %s1505_s18, %s1506_s23  }
  0x35   : > { %1463 = dma.done.wait (%p176_p4), [#allocation10], 128  }
  0x36   : > { %1465 = vsyncadd (%p176_p4), [#allocation10], 4294967168 }
  0x37   : > { %1467 = dma.done.wait (%p176_p4), [#allocation13], 128  }
  0x38   : > { %1469 = vsyncadd (%p176_p4), [#allocation13], 4294967168  ;;  %s415_s2 = sand.u32 1, %s1609_s5   ;;  %s417_s20 = sand.u32 1, %s1492_s26  }
  0x39   : > { %s1037_s19 = sshll.u32 %s417_s20, 6  ;;  %s416_s25 = scalar_lea.sflag [#allocation10], %s415_s2 }
  0x3a   : > { %s1704_s30 = scalar_lea.vmem [#allocation14], %s1037_s19 }
  0x3b   : > { %1471 = dma.done.wait (%p1632_p6), %s416_s25, 1024  }
  0x3c   : > { %1473 = vsyncadd (%p1632_p6), %s416_s25, 4294966272  ;;  %s1038_s22 = sshll.u32 %s417_s20, 4  ;;  %p464_p4 = scmp.lt.s32.totalorder %s1609_s5, 1 }
  0x3d   : > { %s1718_s8 = scalar_lea.vmem [#allocation18], %s1038_s22  ;;  %p1863_p7 = scmp.ne.s32.totalorder %s1609_s5, 0 }
  0x3e   : > { %s1712_s15 = scalar_select %p464_p4, %s1609_s5, 1 }
  0x3f   : > { %470 = sbr.rel (%p1863_p7) target bundleno = 808 (0x328), region = 72  ;;  %s482_s14 = sld [smem:[#allocation7]] (!%p1863_p7) }
  0x40   : > { %s466_s1 = scalar_lea.vmem %s1838_s7, %s1712_s15  ;;  %s521_s18 = sld [smem:[#allocation8]] (!%p1863_p7) }
  0x44   : > { %v471_v0 = vld [vmem:[%s1831_s0] sm:$0xff]  ;;  %vm544_vm4 = vcmask 64512   ;;  %v576_v37 = vlaneseq  ;;  %vm514_vm6 = vcmask 7168   ;;  %v1507_v55 = vmov -1e+30  }
  0x45   : > { %v472_v1 = vld [vmem:[#allocation9] sm:$0xff]  ;;  %v473_v8 = vld [vmem:[#allocation12] sm:$0xff]  ;;  %v483_v9 = vstv %s482_s14  ;;  %515 = vst.msk [vmem:[#allocation3] sm:$0xff] %vm514_vm6, %v1507_v55  ;;  %v1508_v57 = vmov 0.0   ;;  %vm606_vm7 = vcmask 57344   ;;  %vm628_vm9 = vcmask 0  }
  0x46   : > { %v474_v2 = vld [vmem:[%s1835_s4] sm:$0x3]  ;;  %509 = vst [vmem:[#allocation16] sm:$0xff] %v473_v8  ;;  %537 = vmatpush.xpose.msra.mxu0 %v473_v8  ;;  %v542_v30 = vstv %s521_s18  ;;  %v577_v38 = vshrl.u32 %v576_v37, 7  ;;  %v579_v39 = vand.u32 127, %v576_v37 }
  0x47   : > { %v475_v3 = vperm.slane %v474_v2, 0  ;;  %v477_v4 = vperm.slane %v474_v2, 1  ;;  %516 = vst.msk [vmem:[#allocation3 + $0x8] sm:$0xff] %vm514_vm6, %v1507_v55 }
  0x48   : > { %vm580_vm5 = vcmp.eq.s32.totalorder %v577_v38, %v579_v39  ;;  %517 = vst.msk [vmem:[#allocation4] sm:$0xff] %vm514_vm6, %v1508_v57 }
  0x49   : > { %v476_v5 = vmul.f32 %v475_v3, %v471_v0  ;;  %v478_v6 = vmul.f32 %v477_v4, %v472_v1  ;;  %518 = vst.msk [vmem:[#allocation4 + $0x8] sm:$0xff] %vm514_vm6, %v1508_v57 }
  0x4a   : > { %519 = vst.msk [vmem:[#allocation5] sm:$0xff] %vm514_vm6, %v1508_v57 }
  0x4b   : > { %v479_v7 = vadd.f32 %v478_v6, %v476_v5  ;;  %520 = vst.msk [vmem:[#allocation5 + $0x8] sm:$0xff] %vm514_vm6, %v1508_v57 }
  0x4d   : > { %480 = vadd.xlane.f32.xlu0 %v479_v7 }
  0xc0   : > { %v481_v10 = vpop.xlane.xlu0 %480 }
  0xc1   : > { %v484_v11 = vadd.f32 %v483_v9, %v481_v10 }
  0xc3   : > { %v1040_v12 = vmul.f32 -1.442695, %v484_v11 }
  0xc5   : > { %1211 = vpow2.f32 %v1040_v12 }
  0xcb   : > { %v1212_v13 = vpop.eup %1211 }
  0xcc   : > { %v488_v14 = vadd.f32 1.0, %v1212_v13 }
  0xce   : > { %1213 = vrcp.f32 %v488_v14  ;;  %v500_v18 = vand.u32 2147483648, %v488_v14  ;;  %v498_v20 = vand.u32 2147483647, %v488_v14  ;;  %vm494_vm1 = vweird.f32 %v488_v14 }
  0xd0   : > { %v501_v22 = vor.u32 1.1754944e-38, %v500_v18  ;;  %vm499_vm3 = vcmp.eq.f32.partialorder %v498_v20, 8.507059e+37 }
  0xd4   : > { %v1214_v15 = vpop.eup %1213 }
  0xd5   : > { %v490_v16 = vmul.f32 %v1214_v15, %v488_v14  ;;  %vm495_vm0 = vweird.f32 %v1214_v15 }
  0xd6   : > { %vm496_vm2 = vmor %vm494_vm1, %vm495_vm0 }
  0xd7   : > { %v491_v17 = vsub.f32 1.0, %v490_v16 }
  0xd9   : > { %v492_v19 = vmul.f32 %v1214_v15, %v491_v17 }
  0xdb   : > { %v493_v21 = vadd.f32 %v1214_v15, %v492_v19 }
  0xdd   : > { %v497_v23 = vsel %vm496_vm2, %v1214_v15, %v493_v21 }
  0xde   : > { %v502_v24 = vsel %vm499_vm3, %v501_v22, %v497_v23 }
  0xdf   : > { %v505_v25 = vsub.f32 1.0, %v502_v24  ;;  %v504_v26 = vmul.f32 %v502_v24, %v471_v0 }
  0xe1   : > { %v506_v27 = vmul.f32 %v505_v25, %v472_v1 }
  0xe3   : > { %v507_v28 = vadd.f32 %v506_v27, %v504_v26 }
  0xe5   : > { %508 = vst [vmem:[#allocation15] sm:$0xff] %v507_v28  ;;  %v1101_v29 = vpack.c.bf16 %v473_v8, %v507_v28  ;;  %538 = vmatmul.f32.vlgmr.msra.gmra.mxu0 %v507_v28  ;;  %v1509_v28 = vmov 8.0  }
  0xe7   : > { %1102 = vst [vmem:[#allocation2] sm:$0xff] %v1101_v29  }
 0x162   : > { %v539_v31 = vpop.f32.mrf.mxu0 }
 0x163   : > { %v543_v32 = vmul.f32 %v542_v30, %v539_v31 }
 0x165   : > { %v545_v33 = vsel %vm544_vm4, %v543_v32, -inf  ;;  %v581_v42 = vsel %vm580_vm5, %v543_v32, 0.0 }
 0x166   : > { %546 = vmax.xlane.f32.xlu0 %v545_v33  ;;  %v582_v43 = vsel %vm544_vm4, %v581_v42, 0.0  ;;  %v557_v44 = vrot.slane %v545_v33, 4 }
 0x168   : > { %v558_v45 = vmax.f32 %v545_v33, %v557_v44 }
 0x16a   : > { %v559_v46 = vrot.slane %v558_v45, 2 }
 0x16c   : > { %v560_v47 = vmax.f32 %v558_v45, %v559_v46 }
 0x16e   : > { %v561_v48 = vrot.slane %v560_v47, 1 }
 0x170   : > { %v562_v49 = vmax.f32 %v560_v47, %v561_v48 }
 0x172   : > { %v563_v50 = vsub.f32 %v543_v32, %v562_v49 }
 0x174   : > { %v564_v51 = vmul.f32 1.442695, %v563_v50 }
 0x1d9   : > { %v547_v34 = vpop.xlane.xlu0 %546 }
 0x1da   : > { %v548_v35 = vsub.f32 %v543_v32, %v547_v34 }
 0x1dc   : > { %v549_v36 = vmul.f32 1.442695, %v548_v35 }
 0x1de   : > { %1215 = vpow2.f32 %v549_v36 }
 0x1df   : > { %1217 = vpow2.f32 %v564_v51 }
 0x1e4   : > { %v1216_v40 = vpop.eup %1215 }
 0x1e5   : > { %v551_v41 = vsel %vm544_vm4, %v1216_v40, 0.0  ;;  %v1218_v52 = vpop.eup %1217 }
 0x1e6   : > { %552 = vadd.xlane.f32.xlu1 %v551_v41  ;;  %v566_v53 = vsel %vm544_vm4, %v1218_v52, 0.0 }
 0x1e7   : > { %v567_v54 = vrot.slane %v566_v53, 4 }
 0x1e9   : > { %v568_v56 = vadd.f32 %v567_v54, %v566_v53 }
 0x1eb   : > { %v569_v58 = vrot.slane %v568_v56, 2 }
 0x1ed   : > { %v570_v59 = vadd.f32 %v569_v58, %v568_v56 }
 0x1ee   : > { %583 = vadd.xlane.f32.xlu1 %v582_v43 }
 0x1ef   : > { %v571_v60 = vrot.slane %v570_v59, 1 }
 0x1f1   : > { %v572_v61 = vadd.f32 %v571_v60, %v570_v59 }
 0x259   : > { %v553_v62 = vpop.xlane.xlu1 %552 }
 0x25a   : > { %1219 = vlog2.f32 %v553_v62 }
 0x25b   : > { %1221 = vlog2.f32 %v572_v61 }
 0x25c   : > { %1223 = vrcp.f32 %v1509_v28 }
 0x260   : > { %v1220_v63 = vpop.eup %1219 }
 0x261   : > { %v555_v0 = vmul.f32 0.6931472, %v1220_v63  ;;  %v584_v1 = vpop.xlane.xlu1 %583  ;;  %v1222_v2 = vpop.eup %1221 }
 0x262   : > { %v585_v3 = vrot.slane %v584_v1, 4  ;;  %v574_v7 = vmul.f32 0.6931472, %v1222_v2  ;;  %v1224_v29 = vpop.eup %1223 }
 0x263   : > { %v556_v4 = vadd.f32 %v555_v0, %v547_v34  ;;  %v621_v30 = vmul.f32 8.0, %v1224_v29  ;;  %vm625_vm8 = vweird.f32 %v1224_v29 }
 0x264   : > { %v586_v5 = vadd.f32 %v585_v3, %v584_v1  ;;  %v575_v10 = vadd.f32 %v574_v7, %v562_v49 }
 0x265   : > { %v594_v6 = vsel %vm514_vm6, %v556_v4, 0.0  ;;  %v622_v31 = vsub.f32 1.0, %v621_v30 }
 0x266   : > { %v587_v8 = vrot.slane %v586_v5, 2  ;;  %595 = vadd.xlane.f32.xlu2 %v594_v6  ;;  %v607_v13 = vsel %vm606_vm7, %v575_v10, 0.0 }
 0x267   : > { %v623_v33 = vmul.f32 %v1224_v29, %v622_v31 }
 0x268   : > { %v588_v9 = vadd.f32 %v587_v8, %v586_v5 }
 0x269   : > { %v624_v36 = vadd.f32 %v1224_v29, %v623_v33 }
 0x26a   : > { %v589_v11 = vrot.slane %v588_v9, 1 }
 0x26b   : > { %v626_v40 = vsel %vm625_vm8, %v1224_v29, %v624_v36 }
 0x26c   : > { %v590_v12 = vadd.f32 %v589_v11, %v588_v9 }
 0x26e   : > { %1103 = vpush %v590_v12  ;;  %608 = vadd.xlane.f32.xlu2 %v607_v13 }
 0x29f   : > { %s1104_s23 = spop %1103 }
 0x2a0   : > { %v592_v32 = vstv %s1104_s23 }
 0x2a1   : > { %v593_v35 = vmul.f32 2.0, %v592_v32 }
 0x2d9   : > { %v596_v14 = vpop.xlane.xlu2 %595 }
 0x2da   : > { %v597_v15 = vrot.slane %v596_v14, 4 }
 0x2dc   : > { %v598_v16 = vadd.f32 %v597_v15, %v596_v14 }
 0x2de   : > { %v599_v17 = vrot.slane %v598_v16, 2 }
 0x2e0   : > { %v600_v18 = vadd.f32 %v599_v17, %v598_v16 }
 0x2e1   : > { %v609_v19 = vpop.xlane.xlu2 %608 }
 0x2e2   : > { %v610_v20 = vrot.slane %v609_v19, 4  ;;  %v601_v21 = vrot.slane %v600_v18, 1 }
 0x2e4   : > { %v611_v22 = vadd.f32 %v610_v20, %v609_v19  ;;  %v602_v23 = vadd.f32 %v601_v21, %v600_v18 }
 0x2e6   : > { %v612_v24 = vrot.slane %v611_v22, 2  ;;  %1105 = vpush %v602_v23 }
 0x2e8   : > { %v613_v25 = vadd.f32 %v612_v24, %v611_v22 }
 0x2ea   : > { %v614_v26 = vrot.slane %v613_v25, 1 }
 0x2ec   : > { %v615_v27 = vadd.f32 %v614_v26, %v613_v25 }
 0x2ee   : > { %1107 = vpush %v615_v27 }
 0x317   : > { %s1106_s20 = spop %1105 }
 0x318   : > { %v604_v34 = vstv %s1106_s20 }
 0x319   : > { %v605_v37 = vsub.f32 %v593_v35, %v604_v34 }
 0x31f   : > { %s1108_s19 = spop %1107 }
 0x320   : > { %v617_v38 = vstv %s1108_s19 }
 0x321   : > { %v618_v39 = vsub.f32 %v605_v37, %v617_v38 }
 0x323   : > { %v619_v41 = vmul.f32 -0.5, %v618_v39 }
 0x325   : > { %v627_v42 = vmul.f32 %v626_v40, %v619_v41 }
 0x327   : > { %629 = vst.msk [vmem:[#allocation6] sm:$0x1] %vm628_vm9, %v627_v42 }
 0x328 PF: > { %v1097_v43 = vld [vmem:[%s1704_s30 + $0x38] sm:$0xff]  ;;  %v1096_v44 = vld [vmem:[%s1704_s30 + $0x30] sm:$0xff]  ;;  %v1510_v45 = vmov 0   ;;  %v1095_v47 = vld [vmem:[%s1704_s30 + $0x28] sm:$0xff]  ;;  %vm762_vm10 = vcmask 7168   ;;  %v769_v3 = vlaneseq  ;;  %p1078_p6 = scmp.ne.s32.totalorder %s1609_s5, 1 }
 0x329   : > { %706 = vmatpush.bf16.msra.mxu0 %v1097_v43  ;;  %1226 = vset.pattern.permute.xlu2 %v1510_v45  ;;  %v767_v46 = vld [vmem:[%s1834_s3] sm:$0xff]  ;;  %v1094_v48 = vld [vmem:[%s1704_s30 + $0x20] sm:$0xff]  ;;  %v1091_v51 = vld [vmem:[%s1704_s30 + $0x8] sm:$0xff] }
 0x32a   : > { %1225 = vset.pattern.permute.xlu1 %v1510_v45  ;;  %1227 = vset.pattern.permute.xlu0 %v1510_v45  ;;  %v1093_v49 = vld [vmem:[%s1704_s30 + $0x18] sm:$0xff]  ;;  %v1092_v50 = vld [vmem:[%s1704_s30 + $0x10] sm:$0xff]  ;;  %v1090_v52 = vld [vmem:[%s1704_s30] sm:$0xff]  ;;  %s1077_s30 = sshll.u32 %s1609_s5, 7  ;;  %v1760_v4 = vand.u32 127, %v769_v3 }
 0x32b   : > { %776 = vperm.xlu2 %1226, %v767_v46   ;;  %v1089_v53 = vld [vmem:[#allocation2] sm:$0xff]  ;;  %v726_v59 = vld [vmem:[#allocation3] sm:$0xff]  ;;  %v727_v63 = vld [vmem:[#allocation3 + $0x8] sm:$0xff]  ;;  %v771_v5 = vstv %s1077_s30 }
 0x32c   : > { %v1228_v54 = vld [vmem:[%s466_s1] ss:$0 sm:$0xff]  ;;  %v772_v6 = vadd.s32 %v771_v5, %v1760_v4  ;;  %v773_v18 = vld [vmem:[#allocation5] sm:$0xff]  ;;  %v736_v24 = vld [vmem:[#allocation4] sm:$0xff] }
 0x32d   : > { %707 = vmatpush.bf16.msra.mxu0 %v1096_v44  ;;  %v737_v29 = vld [vmem:[#allocation4 + $0x8] sm:$0xff]  ;;  %v774_v33 = vld [vmem:[#allocation5 + $0x8] sm:$0xff] }
 0x331   : > { %708 = vmatpush.bf16.msra.mxu0 %v1095_v47 }
 0x335   : > { %709 = vmatpush.bf16.msra.mxu0 %v1094_v48 }
 0x339   : > { %710 = vmatpush.bf16.msra.mxu0 %v1093_v49 }
 0x33d   : > { %711 = vmatpush.bf16.msra.mxu0 %v1092_v50 }
 0x341   : > { %712 = vmatpush.bf16.msra.mxu0 %v1091_v51 }
 0x345   : > { %713 = vmatpush.bf16.msra.mxu0 %v1090_v52 }
 0x348   : > { %714 = vmatmul.bf16.vlgmr.msra.gmra.mxu0 %v1089_v53 }
 0x385   : > { %v777_v7 = vpop.permute.xlu2 %776 }
 0x386   : > { %vm778_vm11 = vcmp.eq.s32.totalorder %v772_v6, %v777_v7 }
 0x3c5   : > { %v715_v55 = vpop.f32.mrf.mxu0 }
 0x3c6   : > { %v716_v56 = vadd.f32 %v1228_v54, %v715_v55 }
 0x3c8   : > { %720 = vst [vmem:[%s1718_s8] sm:$0xff] %v716_v56  ;;  %722 = vmax.xlane.f32.xlu0 %v716_v56  ;;  %v779_v8 = vsel %vm778_vm11, %v716_v56, 0.0 }
 0x3cd   : > { %v717_v57 = vpop.f32.mrf.mxu0 }
 0x3ce   : > { %v718_v58 = vadd.f32 %v1228_v54, %v717_v57 }
 0x3d0   : > { %721 = vst [vmem:[%s1718_s8 + $0x8] sm:$0xff] %v718_v58  ;;  %724 = vmax.xlane.f32.xlu0 %v718_v58  ;;  %v780_v17 = vsel %vm778_vm11, %v718_v58, 0.0 }
 0x43b   : > { %v723_v60 = vpop.xlane.xlu0 %722 }
 0x43c   : > { %v728_v61 = vmax.f32 %v726_v59, %v723_v60 }
 0x43e   : > { %v730_v62 = vsub.f32 %v726_v59, %v728_v61  ;;  %765 = vst.msk [vmem:[#allocation3] sm:$0xff] %vm762_vm10, %v728_v61  ;;  %742 = vperm.xlu1 %1225, %v728_v61  }
 0x440   : > { %v732_v21 = vmul.f32 1.442695, %v730_v62 }
 0x443   : > { %v725_v0 = vpop.xlane.xlu0 %724 }
 0x444   : > { %v729_v1 = vmax.f32 %v727_v63, %v725_v0 }
 0x446   : > { %v731_v2 = vsub.f32 %v727_v63, %v729_v1  ;;  %766 = vst.msk [vmem:[#allocation3 + $0x8] sm:$0xff] %vm762_vm10, %v729_v1  ;;  %747 = vperm.xlu1 %1225, %v729_v1  }
 0x448   : > { %v734_v22 = vmul.f32 1.442695, %v731_v2 }
 0x470   : > { %781 = vadd.xlane.f32.xlu1 %v779_v8 }
 0x4b0   : > { %v743_v9 = vpop.permute.xlu1 %742 }
 0x4b1   : > { %v750_v10 = vsub.f32 %v716_v56, %v743_v9 }
 0x4b3   : > { %v752_v11 = vmul.f32 1.442695, %v750_v10 }
 0x4b5   : > { %1229 = vpow2.f32 %v752_v11 }
 0x4b8   : > { %v748_v12 = vpop.permute.xlu1 %747 }
 0x4b9   : > { %v751_v13 = vsub.f32 %v718_v58, %v748_v12 }
 0x4bb   : > { %v1230_v14 = vpop.eup %1229  ;;  %v754_v15 = vmul.f32 1.442695, %v751_v13 }
 0x4bc   : > { %756 = vadd.xlane.f32.xlu2 %v1230_v14 }
 0x4bd   : > { %1231 = vpow2.f32 %v754_v15 }
 0x4be   : > { %1233 = vpow2.f32 %v732_v21 }
 0x4bf   : > { %1235 = vpow2.f32 %v734_v22 }
 0x4c3   : > { %v1232_v16 = vpop.eup %1231 }
 0x4c4   : > { %758 = vadd.xlane.f32.xlu0 %v1232_v16  ;;  %v1234_v23 = vpop.eup %1233 }
 0x4c5   : > { %v738_v25 = vmul.f32 %v1234_v23, %v736_v24  ;;  %v1236_v28 = vpop.eup %1235 }
 0x4c6   : > { %v739_v30 = vmul.f32 %v1236_v28, %v737_v29 }
 0x4cc   : > { %783 = vadd.xlane.f32.xlu0 %v780_v17 }
 0x4e3   : > { %v782_v19 = vpop.xlane.xlu1 %781 }
 0x4e4   : > { %v785_v20 = vadd.f32 %v782_v19, %v773_v18 }
 0x4e6   : > { %787 = vst.msk [vmem:[#allocation5] sm:$0xff] %vm762_vm10, %v785_v20 }
 0x52f   : > { %v757_v26 = vpop.xlane.xlu2 %756 }
 0x530   : > { %v760_v27 = vadd.f32 %v757_v26, %v738_v25 }
 0x532   : > { %763 = vst.msk [vmem:[#allocation4] sm:$0xff] %vm762_vm10, %v760_v27 }
 0x537   : > { %v759_v31 = vpop.xlane.xlu0 %758 }
 0x538   : > { %v761_v32 = vadd.f32 %v759_v31, %v739_v30 }
 0x53a   : > { %764 = vst.msk [vmem:[#allocation4 + $0x8] sm:$0xff] %vm762_vm10, %v761_v32 }
 0x53e   : > { %792 = sbr.rel (%p1078_p6) target bundleno = 1551 (0x60f), region = 76 }
 0x53f   : > { %v784_v34 = vpop.xlane.xlu0 %783 }
 0x540   : > { %v786_v35 = vadd.f32 %v784_v34, %v774_v33 }
 0x542   : > { %788 = vst.msk [vmem:[#allocation5 + $0x8] sm:$0xff] %vm762_vm10, %v786_v35 }
 0x543   : > { %v795_v36 = vld [vmem:[#allocation4] sm:$0xff]  ;;  %v796_v37 = vld [vmem:[#allocation4 + $0x8] sm:$0xff]  ;;  %v1511_v38 = vmov 0   ;;  %v793_v40 = vld [vmem:[#allocation3] sm:$0xff]  ;;  %v1512_v62 = vmov 16.0   ;;  %vm831_vm13 = vcmp.eq.s32.totalorder %v1760_v4, 1 }
 0x544   : > { %1238 = vlog2.f32 %v795_v36  ;;  %1237 = vset.pattern.permute.xlu0 %v1511_v38  ;;  %v794_v42 = vld [vmem:[#allocation3 + $0x8] sm:$0xff]  ;;  %v803_v45 = vld [vmem:[#allocation5] sm:$0xff]  ;;  %v830_v54 = vld [vmem:[#allocation6] sm:$0x1]  ;;  %vm829_vm14 = vcmp.eq.s32.totalorder %v1760_v4, 0 }
 0x545   : > { %1240 = vlog2.f32 %v796_v37 }
 0x546   : > { %1242 = vrcp.f32 %v1512_v62 }
 0x549   : > { %v804_v47 = vld [vmem:[#allocation5 + $0x8] sm:$0xff] }
 0x54a   : > { %v1239_v39 = vpop.eup %1238 }
 0x54b   : > { %v1241_v41 = vpop.eup %1240  ;;  %v798_v43 = vmul.f32 0.6931472, %v1239_v39 }
 0x54c   : > { %v800_v44 = vmul.f32 0.6931472, %v1241_v41  ;;  %v1243_v63 = vpop.eup %1242 }
 0x54d   : > { %v801_v46 = vadd.f32 %v798_v43, %v793_v40  ;;  %v822_v0 = vmul.f32 16.0, %v1243_v63  ;;  %vm826_vm12 = vweird.f32 %v1243_v63 }
 0x54e   : > { %v802_v48 = vadd.f32 %v800_v44, %v794_v42 }
 0x54f   : > { %v805_v49 = vsub.f32 %v803_v45, %v801_v46  ;;  %v823_v1 = vsub.f32 1.0, %v822_v0 }
 0x550   : > { %v806_v50 = vsub.f32 %v804_v47, %v802_v48 }
 0x551   : > { %v807_v51 = vsel %vm762_vm10, %v805_v49, 0.0  ;;  %v824_v2 = vmul.f32 %v1243_v63, %v823_v1 }
 0x552   : > { %v808_v52 = vsel %vm762_vm10, %v806_v50, 0.0 }
 0x553   : > { %v809_v53 = vadd.f32 %v808_v52, %v807_v51  ;;  %v825_v3 = vadd.f32 %v1243_v63, %v824_v2 }
 0x555   : > { %810 = vadd.xlane.f32.xlu0 %v809_v53  ;;  %v827_v7 = vsel %vm826_vm12, %v1243_v63, %v825_v3 }
 0x569   : > { %835 = vperm.xlu0 %1237, %v830_v54  }
 0x5c8   : > { %v811_v55 = vpop.xlane.xlu0 %810 }
 0x5c9   : > { %v812_v56 = vrot.slane %v811_v55, 4 }
 0x5cb   : > { %v813_v57 = vadd.f32 %v812_v56, %v811_v55 }
 0x5cd   : > { %v814_v58 = vrot.slane %v813_v57, 2 }
 0x5cf   : > { %v815_v59 = vadd.f32 %v814_v58, %v813_v57 }
 0x5d1   : > { %v816_v60 = vrot.slane %v815_v59, 1 }
 0x5d3   : > { %v817_v61 = vadd.f32 %v816_v60, %v815_v59 }
 0x5d5   : > { %1109 = vpush %v817_v61 }
 0x5db   : > { %v836_v5 = vpop.permute.xlu0 %835 }
 0x5dc   : > { %v838_v9 = vperm.slane %v836_v5, 0 }
 0x606   : > { %s1110_s15 = spop %1109 }
 0x607   : > { %v819_v6 = vstv %s1110_s15 }
 0x608   : > { %v820_v8 = vsub.f32 0.0, %v819_v6 }
 0x60a   : > { %v828_v10 = vmul.f32 %v827_v7, %v820_v8 }
 0x60c   : > { %v832_v11 = vsel %vm831_vm13, %v828_v10, 0.0 }
 0x60d   : > { %v839_v12 = vsel %vm829_vm14, %v838_v9, %v832_v11 }
 0x60e   : > { %840 = vst [vmem:[#allocation19] sm:$0x1] %v839_v12 }
 0x60f PF: > { %s854_s12 = sshll.u32 %s1840_s9, 4  ;;  %s1513_s16 = smov [#allocation15]   ;;  %s855_s12 = int_to_ptr.hbm [resolvable:$true] %s854_s12 }
 0x610   : > { %s852_s29 = sshll.u32 %s1513_s16, 4  ;;  %p1864_p13 = scmp.eq.s32.totalorder %s1609_s5, 1  ;;  %s853_s29 = int_to_ptr.vmem [resolvable:$true] %s852_s29 }
 0x611   : > { %s1514_s14 = smov [#allocation16]   ;;  %s866_s19 = sshll.u32 %s1841_s10, 4  ;;  %s867_s19 = int_to_ptr.hbm [resolvable:$true] %s866_s19 }
 0x612   : > { %1122 = dma.vmem_to_hbm [thread:$0]  (%p1864_p13), %s853_s29, 128, %s855_s12, [#allocation11]  }
 0x613   : > { %s864_s18 = sshll.u32 %s1514_s14, 4  ;;  %p1865_p1 = pmov %p1864_p13  ;;  %s865_s18 = int_to_ptr.vmem [resolvable:$true] %s864_s18 }
 0x614   : > { %s1082_s25 = sshll.u32 %s1609_s5, 3  ;;  %s877_s30 = sshll.u32 %s1718_s8, 4  ;;  %s878_s30 = int_to_ptr.vmem [resolvable:$true] %s877_s30 }
 0x615   : > { %1124 = dma.vmem_to_hbm [thread:$0]  (%p1865_p1), %s865_s18, 128, %s867_s19, [#allocation17]  }
 0x616   : > { %s876_s21 = scalar_lea.hbm %s1842_s11, %s1082_s25  ;;  %s842_s1 = scalar_lea.sflag [#allocation11], %s415_s2 }
 0x617   : > { %s879_s15 = sshll.u32 %s876_s21, 4  ;;  %s1410_s14 = scalar_lea.hbm %s1842_s11, 32  ;;  %s880_s15 = int_to_ptr.hbm [resolvable:$true] %s879_s15 }
 0x618   : > { %s1404_s13 = sshra.s32 %s880_s15, 4  ;;  %s1405_s13 = int_to_ptr.hbm [resolvable:$true] %s1404_s13 }
 0x619   : > { %s1406_s12 = scalar_lea.hbm %s1405_s13, 16  ;;  %p1411_p10 = scmp.lt.s32.totalorder %s1405_s13, %s1842_s11 }
 0x61a   : > { %p1407_p2 = scmp.ne.s32.totalorder %s1405_s13, %s1406_s12  ;;  %p1412_p0 = scmp.lt.s32.totalorder %s1410_s14, %s1406_s12 }
 0x61c   : > { %p1408_p9 = pnand %p1407_p2, %p1643_p11  ;;  %p1413_p3 = por %p1412_p0, %p1411_p10 }
 0x61e   : > { %p1409_p5 = pneg %p1408_p9 }
 0x620   : > { %p1414_p8 = pnand %p1413_p3, %p1409_p5 }
 0x622   : > { %1417 = shalt.err (!%p1414_p8)
}
 0x623   : > { %s1515_s2 = smov 128   ;;  %s1516_s8 = smov 256  }
 0x624   : > { %s1517_s20 = smov 8   ;;  %s1866_s22 = sld [smem:[#allocation31_spill]] }
 0x625   : > { %1125 = dma.vmem_to_hbm [thread:$0]  (%p1643_p11), %s878_s30, 256, %s880_s15, %s842_s1, %s1515_s2, %s1516_s8, %s1517_s20  }
 0x626   : > { %s1518_s21 = smov [#allocation19]   ;;  %p1867_p4 = pmov %p1865_p1 }
 0x627   : > { %s892_s16 = sshll.u32 %s1518_s21, 4  ;;  %p1868_p7 = pmov %p1865_p1  ;;  %s893_s16 = int_to_ptr.vmem [resolvable:$true] %s892_s16 }
 0x62a   : > { %s894_s24 = sshll.u32 %s1866_s22, 4  ;;  %s895_s24 = int_to_ptr.hbm [resolvable:$true] %s894_s24 }
 0x62b   : > { %1127 = dma.vmem_to_hbm [thread:$0]  (%p1867_p4), %s893_s16, 16, %s895_s24, [#allocation17]  }
 0x62c   : > { %1475 = dma.done.wait (%p1868_p7), [#allocation11], 128   ;;  %p1869_p6 = pmov %p1865_p1 }
 0x62d   : > { %p1870_p13 = pmov %p1865_p1 }
 0x62e   : > { %1477 = vsyncadd (%p1869_p6), [#allocation11], 4294967168 }
 0x62f   : > { %1479 = dma.done.wait (%p1870_p13), [#allocation17], 144   ;;  %p1871_p11 = pmov %p1865_p1 }
 0x631   : > { %1481 = vsyncadd (%p1871_p11), [#allocation17], 4294967152 }
 0x632 PF: > { %s1872_s17 = sadd.s32 4294967294, %s1500_s28   ;;  %p1874_p1 = scmp.ge.s32.totalorder %s1500_s28, 2 }
 0x633   : > { %s921_s15 = sand.u32 1, %s1872_s17  }
 0x634   : > { %p1147_p2 = pnand %p1874_p1, %p1647_p12  ;;  %s922_s1 = scalar_lea.sflag [#allocation11], %s921_s15 }
 0x636   : > { %p1148_p9 = pneg %p1147_p2 }
 0x638   : > { %1483 = dma.done.wait (%p1148_p9), %s922_s1, 256  }
 0x639   : > { %1485 = vsyncadd (%p1148_p9), %s922_s1, 4294967040  ;;  %s1875_s28 = sld [smem:[#allocation26_spill]]  ;;  %s1877_s25 = smov %s1492_s26 }
 0x63a   : > { %s1876_s13 = sld [smem:[#allocation27_spill]]  ;;  %s1878_s26 = smov %s1496_s27 }
 0x63f   : > { %p26_p5 = scmp.ge.s32.totalorder %s1875_s28, 4  }
 0x640   : > { %s1879_s27 = smov %s1876_s13 }
 0x641   :  { %28 = sbr.rel (!%p26_p5) target bundleno = 11 (0xb), region = 142 }
 0x646   :  { %928 = vsyncpa [#allocation10], 1 }
 0x647   :  { %930 = vsyncpa [#allocation10 + $0x1], 1 }
 0x648   :  { %931 = vsyncpa [#allocation13], 1 }
 0x649   :  { %932 = vsyncpa [#allocation11], 1 }
 0x64a   :  { %934 = vsyncpa [#allocation11 + $0x1], 1 }
 0x64b   :  { %935 = vsyncpa [#allocation17], 1 }

</bundles_post_ra>
